<compile_context>
chip_gen: v6e
topology: v6e:2x2x1
jax: 0.10.0
libtpu: 0.0.40
codegen_flags: <defaults>
</compile_context>

<pallas_src>
import math
import jax
import jax.numpy as jnp
from jax import lax
from jax.experimental import pallas as pl
from jax.experimental.pallas import tpu as pltpu


# ----------------------------------------------------------------------------
# VMEM budgeting
# ----------------------------------------------------------------------------
def _vmem_limit_bytes() -> int:
    """Scoped-VMEM limit with headroom, derived from the actual chip."""
    cap = None
    try:
        info = pltpu.get_tpu_info()
        cap = getattr(info, "vmem_capacity_bytes", None)
    except Exception:
        cap = None
    if not cap:
        cap = 64 * 1024 * 1024          # conservative (v7x-sized) fallback
    # leave headroom for Mosaic internal scratch:
    #   64 MiB parts (v7x)      -> 48 MiB limit
    #   128 MiB parts (v5e/v6e) -> 96 MiB limit
    return int(cap - max(16 * 1024 * 1024, cap // 4))


def _estimate_vmem(tq, s_kv, d_k, D, out_bytes, scores_bytes, return_scores):
    """Rough per-grid-step VMEM model for the attention kernel."""
    est = 0
    est += 2 * tq * d_k * 2                    # Q blocks (double-buffered bf16)
    est += 2 * (2 * s_kv * d_k * 2)            # K and V blocks
    est += 2 * tq * s_kv * 2                   # mask-bias blocks
    est += 2 * d_k * D * 2 + 2 * D * 4         # per-head Wo slice + bo
    est += 2 * tq * D * out_bytes              # output blocks
    est += tq * D * 4                          # f32 accumulator scratch
    est += 4 * tq * s_kv * 4                   # live f32 softmax temps (+slack)
    if return_scores:
        est += 2 * tq * s_kv * scores_bytes    # scores blocks
    return est


def _pick_tq(s_q, s_kv, d_k, D, out_bytes, scores_bytes, return_scores, budget):
    """Largest q-tile that divides Sq and fits the VMEM budget."""
    candidates = [c for c in (1024, 512, 256, 128, 64, 32, 16, 8)
                  if c <= s_q and s_q % c == 0]
    if not candidates:
        return s_q
    for tq in candidates:
        if _estimate_vmem(tq, s_kv, d_k, D, out_bytes, scores_bytes,
                          return_scores) <= budget:
            return tq
    return candidates[-1]


# ----------------------------------------------------------------------------
# Kernel
# ----------------------------------------------------------------------------
def _make_mha_kernel(h: int, return_scores: bool, scores_dtype):
    scores_is_bf16 = jnp.dtype(scores_dtype) == jnp.dtype(jnp.bfloat16)

    def kernel(q_ref, k_ref, v_ref, bias_ref, wo_ref, bo_ref, out_ref, *rest):
        # q_ref    : (1, 1, tq, d_k) bf16   (already scaled by 1/sqrt(d_k))
        # k_ref/v_ref: (1, 1, Skv, d_k) bf16
        # bias_ref : (1, tq, Skv) bf16 additive mask bias
        # wo_ref   : (1, d_k, D) bf16 (rows of Wo belonging to this head)
        # bo_ref   : (1, D) f32
        # out_ref  : (1, tq, D)   out dtype     (accumulated across heads)
        # scores_ref (optional): (1, 1, tq, Skv) scores dtype
        # acc_ref  : (tq, D) f32 scratch
        if return_scores:
            scores_ref, acc_ref = rest
        else:
            (acc_ref,) = rest

        head = pl.program_id(2)

        @pl.when(head == 0)
        def _():
            acc_ref[...] = jnp.zeros_like(acc_ref)

        # scores = (q * scale) @ k^T  — contract over d_k, no transpose copy.
        s = lax.dot_general(q_ref[0, 0], k_ref[0, 0],
                            dimension_numbers=(((1,), (1,)), ((), ())),
                            preferred_element_type=jnp.float32)     # (tq, Skv)
        s = s + bias_ref[0].astype(jnp.float32)

        # softmax over the key axis (reciprocal on the EUP slot).
        m = jnp.max(s, axis=-1, keepdims=True)
        e = jnp.exp(s - m)
        denom = jnp.sum(e, axis=-1, keepdims=True)
        attn = e * pl.reciprocal(denom, approx=True)                # (tq, Skv)

        attn_b = attn.astype(jnp.bfloat16)        # single cast, reused below
        if return_scores:
            if scores_is_bf16:
                scores_ref[0, 0] = attn_b
            else:
                scores_ref[0, 0] = attn.astype(scores_ref.dtype)

        # TODO(synk): dropout on attn (p > 0) not implemented; p = 0 here.
        ctx = jnp.dot(attn_b, v_ref[0, 0],
                      preferred_element_type=jnp.float32)           # (tq, d_k)

        # Fused output projection: acc += ctx_h @ Wo[head].
        acc_ref[...] += jnp.dot(ctx.astype(jnp.bfloat16), wo_ref[0],
                                preferred_element_type=jnp.float32)

        @pl.when(head == h - 1)
        def _():
            out_ref[0] = (acc_ref[...] + bo_ref[...]).astype(out_ref.dtype)

    return kernel


# ----------------------------------------------------------------------------
# Wrapper
# ----------------------------------------------------------------------------
def multi_head_attention(q, k, v, mask, params, h: int, *,
                         scores_dtype=jnp.bfloat16, out_dtype=None,
                         return_scores=True, tq=None):
    """q: (B,Sq,D); k,v: (B,Skv,D); mask: (B,Sq,Skv) (0 => masked).
    params: wq,bq,wk,bk,wv,bv,wo,bo with weights (D,D), biases (1,D).
    Returns (out, attention probabilities) if return_scores else out."""
    B, s_q, D = q.shape
    _, s_kv, _ = k.shape
    assert D % h == 0, "d_model is not divisible by h"
    d_k = D // h
    if out_dtype is None:
        out_dtype = q.dtype

    f32 = jnp.float32
    scale = 1.0 / math.sqrt(d_k)

    # --- Q/K/V projections hoisted to XLA (f32), then head-split + bf16. ---
    Q = (jnp.dot(q.astype(f32), params["wq"].astype(f32))
         + params["bq"].astype(f32)) * scale          # fold 1/sqrt(d_k) once
    K = jnp.dot(k.astype(f32), params["wk"].astype(f32)) + params["bk"].astype(f32)
    V = jnp.dot(v.astype(f32), params["wv"].astype(f32)) + params["bv"].astype(f32)
    Qh = Q.reshape(B, s_q, h, d_k).transpose(0, 2, 1, 3).astype(jnp.bfloat16)
    Kh = K.reshape(B, s_kv, h, d_k).transpose(0, 2, 1, 3).astype(jnp.bfloat16)
    Vh = V.reshape(B, s_kv, h, d_k).transpose(0, 2, 1, 3).astype(jnp.bfloat16)

    # Additive mask bias in bf16 (halves mask DMA, removes in-kernel compare).
    mask_bias = jnp.where(mask == 0, f32(-1e9), f32(0.0)).astype(jnp.bfloat16)

    # Output projection weight, split by head so the kernel needs no dynamic
    # weight slicing: Wo_h[head] = Wo[head*d_k:(head+1)*d_k, :].
    wo_h = params["wo"].astype(jnp.bfloat16).reshape(h, d_k, D)
    bo = params["bo"].astype(f32).reshape(1, D)

    out_bytes = jnp.dtype(out_dtype).itemsize
    scores_bytes = jnp.dtype(scores_dtype).itemsize
    vmem_limit = _vmem_limit_bytes()
    if tq is None:
        tq = _pick_tq(s_q, s_kv, d_k, D, out_bytes, scores_bytes,
                      return_scores, budget=int(0.75 * vmem_limit))
    assert s_q % tq == 0
    n_q = s_q // tq

    kernel = _make_mha_kernel(h, return_scores, scores_dtype)

    in_specs = [
        pl.BlockSpec((1, 1, tq, d_k), lambda b, i, hd: (b, hd, i, 0)),   # Q tile
        pl.BlockSpec((1, 1, s_kv, d_k), lambda b, i, hd: (b, hd, 0, 0)),  # K head
        pl.BlockSpec((1, 1, s_kv, d_k), lambda b, i, hd: (b, hd, 0, 0)),  # V head
        pl.BlockSpec((1, tq, s_kv), lambda b, i, hd: (b, i, 0)),          # mask bias
        pl.BlockSpec((1, d_k, D), lambda b, i, hd: (hd, 0, 0)),           # Wo[head]
        pl.BlockSpec((1, D), lambda b, i, hd: (0, 0)),                    # bo
    ]
    out_spec_out = pl.BlockSpec((1, tq, D), lambda b, i, hd: (b, i, 0))
    if return_scores:
        out_shape = (
            jax.ShapeDtypeStruct((B, s_q, D), out_dtype),
            jax.ShapeDtypeStruct((B, h, s_q, s_kv), scores_dtype),
        )
        out_specs = [
            out_spec_out,
            pl.BlockSpec((1, 1, tq, s_kv), lambda b, i, hd: (b, hd, i, 0)),
        ]
    else:
        out_shape = jax.ShapeDtypeStruct((B, s_q, D), out_dtype)
        out_specs = out_spec_out

    result = pl.pallas_call(
        kernel,
        out_shape=out_shape,
        grid_spec=pltpu.PrefetchScalarGridSpec(
            num_scalar_prefetch=0,
            grid=(B, n_q, h),           # head axis innermost: out accumulator
            in_specs=in_specs,
            out_specs=out_specs,
            scratch_shapes=[pltpu.VMEM((tq, D), jnp.float32)],  # out accumulator
        ),
        compiler_params=pltpu.CompilerParams(
            # batch + q-tile are fully parallel (no cross-step state); only the
            # head axis is "arbitrary" because of the output accumulation.
            dimension_semantics=("parallel", "parallel", "arbitrary"),
            vmem_limit_bytes=vmem_limit),
    )(Qh, Kh, Vh, mask_bias, wo_h, bo)

    if return_scores:
        out, scores = result
        return out, scores
    return result


# ----------------------------------------------------------------------------
# Parameters / reference / test
# ----------------------------------------------------------------------------
def init_params(key, d_model):
    ks = jax.random.split(key, 8)
    bound = 1.0 / math.sqrt(d_model)

    def w(k):
        return jax.random.uniform(k, (d_model, d_model), jnp.float32, -bound, bound)

    def b(k):
        return jax.random.uniform(k, (1, d_model), jnp.float32, -bound, bound)

    return {
        "wq": w(ks[0]), "bq": b(ks[1]),
        "wk": w(ks[2]), "bk": b(ks[3]),
        "wv": w(ks[4]), "bv": b(ks[5]),
        "wo": w(ks[6]), "bo": b(ks[7]),
    }


def reference_mha(q, k, v, mask, params, h):
    """Pure-JAX f32 reference mirroring the PyTorch forward (dropout p=0)."""
    B, S, D = q.shape
    d_k = D // h
    Q = q @ params["wq"] + params["bq"]
    K = k @ params["wk"] + params["bk"]
    V = v @ params["wv"] + params["bv"]
    Q = Q.reshape(B, S, h, d_k).transpose(0, 2, 1, 3)
    K = K.reshape(B, -1, h, d_k).transpose(0, 2, 1, 3)
    V = V.reshape(B, -1, h, d_k).transpose(0, 2, 1, 3)
    scores = jnp.einsum("bhqd,bhkd->bhqk", Q, K) / math.sqrt(d_k)
    scores = jnp.where(mask[:, None, :, :] == 0, -1e9, scores)
    attn = jax.nn.softmax(scores, axis=-1)
    x = jnp.einsum("bhqk,bhkd->bhqd", attn, V)
    x = x.transpose(0, 2, 1, 3).reshape(B, S, D)
    return x @ params["wo"] + params["bo"], attn


if __name__ == "__main__":
    B, S, D, H = 2, 8, 32, 4

    key = jax.random.PRNGKey(0)
    kq, kk, kv, km, kp = jax.random.split(key, 5)
    q = jax.random.normal(kq, (B, S, D), jnp.float32)
    k = jax.random.normal(kk, (B, S, D), jnp.float32)
    v = jax.random.normal(kv, (B, S, D), jnp.float32)
    # mask: 1 = keep, 0 = masked (pad last two key positions of batch 1)
    mask = jnp.ones((B, S, S), jnp.float32)
    mask = mask.at[1, :, S - 2:].set(0.0)

    params = init_params(kp, D)

    out, scores = multi_head_attention(q, k, v, mask, params, H)
    out = jax.block_until_ready(out)
    scores = jax.block_until_ready(scores)

    ref_out, ref_scores = reference_mha(q, k, v, mask, params, H)
    # bf16 MXU operands + bf16 probability writeback => loosened tolerances.
    assert jnp.allclose(out, ref_out, atol=3e-2, rtol=3e-2), "output mismatch"
    assert jnp.allclose(scores.astype(jnp.float32), ref_scores,
                        atol=2.5e-2, rtol=2.5e-2), "scores mismatch"

    print("KERNEL_OK")
</pallas_src>

<mosaic_0001>
module attributes {stable_mosaic.version = 11 : i64} {
  func.func @kernel(%arg0: i32, %arg1: i32, %arg2: i32, %arg3: memref<1x1x8x8xbf16, #tpu.memory_space<vmem>>, %arg4: memref<1x1x8x8xbf16, #tpu.memory_space<vmem>>, %arg5: memref<1x1x8x8xbf16, #tpu.memory_space<vmem>>, %arg6: memref<1x8x8xbf16, #tpu.memory_space<vmem>>, %arg7: memref<1x8x32xbf16, #tpu.memory_space<vmem>>, %arg8: memref<1x32xf32, #tpu.memory_space<vmem>>, %arg9: memref<1x8x32xf32, #tpu.memory_space<vmem>>, %arg10: memref<1x1x8x8xbf16, #tpu.memory_space<vmem>>, %arg11: memref<8x32xf32, #tpu.memory_space<vmem>>) attributes {dimension_semantics = [#tpu.dimension_semantics<parallel>, #tpu.dimension_semantics<parallel>, #tpu.dimension_semantics<arbitrary>], iteration_bounds = array<i64: 2, 1, 4>, scalar_prefetch = 0 : i64, scratch_operands = 1 : i64, tpu.core_type = #tpu.core_type<tc>, window_params = [{transform_indices = @transform_0, window_bounds = array<i64: 1, 1, 8, 8>}, {transform_indices = @transform_1, window_bounds = array<i64: 1, 1, 8, 8>}, {transform_indices = @transform_2, window_bounds = array<i64: 1, 1, 8, 8>}, {transform_indices = @transform_3, window_bounds = array<i64: 1, 8, 8>}, {transform_indices = @transform_4, window_bounds = array<i64: 1, 8, 32>}, {pipeline_mode = #tpu.pipeline_mode<synchronous>, transform_indices = @transform_5, window_bounds = array<i64: 1, 32>}, {transform_indices = @transform_6, window_bounds = array<i64: 1, 8, 32>}, {transform_indices = @transform_7, window_bounds = array<i64: 1, 1, 8, 8>}]} {
    %c0_i32 = arith.constant 0 : i32
    %0 = arith.cmpi eq, %arg2, %c0_i32 : i32
    %1 = arith.extui %0 : i1 to i32
    %c0_i32_0 = arith.constant 0 : i32
    %2 = arith.cmpi ne, %1, %c0_i32_0 : i32
    scf.if %2 {
      %cst_31 = arith.constant 0.000000e+00 : f32
      %39 = vector.broadcast %cst_31 : f32 to vector<8x32xf32>
      %c0_32 = arith.constant 0 : index
      %c0_33 = arith.constant 0 : index
      %40 = vector.load %arg11[%c0_32, %c0_33] : memref<8x32xf32, #tpu.memory_space<vmem>>, vector<8x32xf32>
      tpu.vector_store %arg11[%c0_32, %c0_33], %39 {strides = array<i32>} : memref<8x32xf32, #tpu.memory_space<vmem>>, vector<8x32xf32>,
    } else {
    }
    %c0 = arith.constant 0 : index
    %c0_1 = arith.constant 0 : index
    %c0_2 = arith.constant 0 : index
    %c0_3 = arith.constant 0 : index
    %3 = vector.load %arg3[%c0, %c0_1, %c0_2, %c0_3] : memref<1x1x8x8xbf16, #tpu.memory_space<vmem>>, vector<1x1x8x8xbf16>
    %4 = vector.shape_cast %3 : vector<1x1x8x8xbf16> to vector<8x8xbf16>
    %c0_4 = arith.constant 0 : index
    %c0_5 = arith.constant 0 : index
    %c0_6 = arith.constant 0 : index
    %c0_7 = arith.constant 0 : index
    %5 = vector.load %arg4[%c0_4, %c0_5, %c0_6, %c0_7] : memref<1x1x8x8xbf16, #tpu.memory_space<vmem>>, vector<1x1x8x8xbf16>
    %6 = vector.shape_cast %5 : vector<1x1x8x8xbf16> to vector<8x8xbf16>
    %cst = arith.constant dense<0.000000e+00> : vector<8x8xf32>
    %7 = tpu.matmul %4, %6, %cst {dimension_numbers = #tpu.dot_dimension_numbers<[1], [1], [0], [0], [0, 0, 1, 0], [], []>} : vector<8x8xbf16>, vector<8x8xbf16>, vector<8x8xf32> -> vector<8x8xf32>
    %c0_8 = arith.constant 0 : index
    %c0_9 = arith.constant 0 : index
    %c0_10 = arith.constant 0 : index
    %8 = vector.load %arg6[%c0_8, %c0_9, %c0_10] : memref<1x8x8xbf16, #tpu.memory_space<vmem>>, vector<1x8x8xbf16>
    %9 = vector.shape_cast %8 : vector<1x8x8xbf16> to vector<8x8xbf16>
    %10 = arith.extf %9 : vector<8x8xbf16> to vector<8x8xf32>
    %11 = arith.addf %7, %10 : vector<8x8xf32>
    %cst_11 = arith.constant dense<0xFF800000> : vector<8xf32>
    %12 = vector.multi_reduction <maximumf>, %11, %cst_11 [1] : vector<8x8xf32> to vector<8xf32>
    %13 = vector.shape_cast %12 : vector<8xf32> to vector<8x1xf32>
    %14 = vector.broadcast %13 : vector<8x1xf32> to vector<8x8xf32>
    %15 = arith.subf %11, %14 : vector<8x8xf32>
    %16 = math.exp %15 : vector<8x8xf32>
    %cst_12 = arith.constant dense<0.000000e+00> : vector<8xf32>
    %17 = vector.multi_reduction <add>, %16, %cst_12 [1] : vector<8x8xf32> to vector<8xf32>
    %18 = vector.shape_cast %17 : vector<8xf32> to vector<8x1xf32>
    %19 = tpu.reciprocal %18 {approx = true} : vector<8x1xf32> -> vector<8x1xf32>
    %20 = vector.broadcast %19 : vector<8x1xf32> to vector<8x8xf32>
    %21 = arith.mulf %16, %20 : vector<8x8xf32>
    %22 = arith.truncf %21 : vector<8x8xf32> to vector<8x8xbf16>
    %c0_13 = arith.constant 0 : index
    %c0_14 = arith.constant 0 : index
    %c0_15 = arith.constant 0 : index
    %c0_16 = arith.constant 0 : index
    %23 = vector.load %arg10[%c0_13, %c0_14, %c0_15, %c0_16] : memref<1x1x8x8xbf16, #tpu.memory_space<vmem>>, vector<1x1x8x8xbf16>
    %24 = vector.shape_cast %23 : vector<1x1x8x8xbf16> to vector<8x8xbf16>
    %25 = vector.shape_cast %22 : vector<8x8xbf16> to vector<1x1x8x8xbf16>
    tpu.vector_store %arg10[%c0_13, %c0_14, %c0_15, %c0_16], %25 {strides = array<i32>} : memref<1x1x8x8xbf16, #tpu.memory_space<vmem>>, vector<1x1x8x8xbf16>,
    %c0_17 = arith.constant 0 : index
    %c0_18 = arith.constant 0 : index
    %c0_19 = arith.constant 0 : index
    %c0_20 = arith.constant 0 : index
    %26 = vector.load %arg5[%c0_17, %c0_18, %c0_19, %c0_20] : memref<1x1x8x8xbf16, #tpu.memory_space<vmem>>, vector<1x1x8x8xbf16>
    %27 = vector.shape_cast %26 : vector<1x1x8x8xbf16> to vector<8x8xbf16>
    %cst_21 = arith.constant dense<0.000000e+00> : vector<8x8xf32>
    %28 = tpu.matmul %22, %27, %cst_21 {dimension_numbers = #tpu.dot_dimension_numbers<[1], [0], [0], [1], [0, 0, 1, 1], [], []>} : vector<8x8xbf16>, vector<8x8xbf16>, vector<8x8xf32> -> vector<8x8xf32>
    %c0_22 = arith.constant 0 : index
    %c0_23 = arith.constant 0 : index
    %29 = vector.load %arg11[%c0_22, %c0_23] : memref<8x32xf32, #tpu.memory_space<vmem>>, vector<8x32xf32>
    %30 = arith.truncf %28 : vector<8x8xf32> to vector<8x8xbf16>
    %c0_24 = arith.constant 0 : index
    %c0_25 = arith.constant 0 : index
    %c0_26 = arith.constant 0 : index
    %31 = vector.load %arg7[%c0_24, %c0_25, %c0_26] : memref<1x8x32xbf16, #tpu.memory_space<vmem>>, vector<1x8x32xbf16>
    %32 = vector.shape_cast %31 : vector<1x8x32xbf16> to vector<8x32xbf16>
    %cst_27 = arith.constant dense<0.000000e+00> : vector<8x32xf32>
    %33 = tpu.matmul %30, %32, %cst_27 {dimension_numbers = #tpu.dot_dimension_numbers<[1], [0], [0], [1], [0, 0, 1, 1], [], []>} : vector<8x8xbf16>, vector<8x32xbf16>, vector<8x32xf32> -> vector<8x32xf32>
    %34 = arith.addf %29, %33 : vector<8x32xf32>
    %c0_28 = arith.constant 0 : index
    %c0_29 = arith.constant 0 : index
    %35 = vector.load %arg11[%c0_28, %c0_29] : memref<8x32xf32, #tpu.memory_space<vmem>>, vector<8x32xf32>
    tpu.vector_store %arg11[%c0_28, %c0_29], %34 {strides = array<i32>} : memref<8x32xf32, #tpu.memory_space<vmem>>, vector<8x32xf32>,
    %c3_i32 = arith.constant 3 : i32
    %36 = arith.cmpi eq, %arg2, %c3_i32 : i32
    %37 = arith.extui %36 : i1 to i32
    %c0_i32_30 = arith.constant 0 : i32
    %38 = arith.cmpi ne, %37, %c0_i32_30 : i32
    scf.if %38 {
      %c0_31 = arith.constant 0 : index
      %c0_32 = arith.constant 0 : index
      %39 = vector.load %arg11[%c0_31, %c0_32] : memref<8x32xf32, #tpu.memory_space<vmem>>, vector<8x32xf32>
      %c0_33 = arith.constant 0 : index
      %c0_34 = arith.constant 0 : index
      %40 = vector.load %arg8[%c0_33, %c0_34] : memref<1x32xf32, #tpu.memory_space<vmem>>, vector<1x32xf32>
      %41 = vector.broadcast %40 : vector<1x32xf32> to vector<8x32xf32>
      %42 = arith.addf %39, %41 : vector<8x32xf32>
      %c0_35 = arith.constant 0 : index
      %c0_36 = arith.constant 0 : index
      %c0_37 = arith.constant 0 : index
      %43 = vector.load %arg9[%c0_35, %c0_36, %c0_37] : memref<1x8x32xf32, #tpu.memory_space<vmem>>, vector<1x8x32xf32>
      %44 = vector.shape_cast %43 : vector<1x8x32xf32> to vector<8x32xf32>
      %45 = vector.shape_cast %42 : vector<8x32xf32> to vector<1x8x32xf32>
      tpu.vector_store %arg9[%c0_35, %c0_36, %c0_37], %45 {strides = array<i32>} : memref<1x8x32xf32, #tpu.memory_space<vmem>>, vector<1x8x32xf32>,
    } else {
    }
    return
  }
  func.func @transform_0(%arg0: i32, %arg1: i32, %arg2: i32) -> (i32, i32, i32, i32) {
    %c0_i32 = arith.constant 0 : i32
    %c0_i32_0 = arith.constant 0 : i32
    return %arg0, %arg2, %arg1, %c0_i32 : i32, i32, i32, i32
  }
  func.func @transform_1(%arg0: i32, %arg1: i32, %arg2: i32) -> (i32, i32, i32, i32) {
    %c0_i32 = arith.constant 0 : i32
    %c0_i32_0 = arith.constant 0 : i32
    %c0_i32_1 = arith.constant 0 : i32
    return %arg0, %arg2, %c0_i32, %c0_i32_0 : i32, i32, i32, i32
  }
  func.func @transform_2(%arg0: i32, %arg1: i32, %arg2: i32) -> (i32, i32, i32, i32) {
    %c0_i32 = arith.constant 0 : i32
    %c0_i32_0 = arith.constant 0 : i32
    %c0_i32_1 = arith.constant 0 : i32
    return %arg0, %arg2, %c0_i32, %c0_i32_0 : i32, i32, i32, i32
  }
  func.func @transform_3(%arg0: i32, %arg1: i32, %arg2: i32) -> (i32, i32, i32) {
    %c0_i32 = arith.constant 0 : i32
    %c0_i32_0 = arith.constant 0 : i32
    return %arg0, %arg1, %c0_i32 : i32, i32, i32
  }
  func.func @transform_4(%arg0: i32, %arg1: i32, %arg2: i32) -> (i32, i32, i32) {
    %c0_i32 = arith.constant 0 : i32
    %c0_i32_0 = arith.constant 0 : i32
    %c0_i32_1 = arith.constant 0 : i32
    return %arg2, %c0_i32, %c0_i32_0 : i32, i32, i32
  }
  func.func @transform_5(%arg0: i32, %arg1: i32, %arg2: i32) -> (i32, i32) {
    %c0_i32 = arith.constant 0 : i32
    %c0_i32_0 = arith.constant 0 : i32
    %c0_i32_1 = arith.constant 0 : i32
    return %c0_i32, %c0_i32_0 : i32, i32
  }
  func.func @transform_6(%arg0: i32, %arg1: i32, %arg2: i32) -> (i32, i32, i32) {
    %c0_i32 = arith.constant 0 : i32
    %c0_i32_0 = arith.constant 0 : i32
    return %arg0, %arg1, %c0_i32 : i32, i32, i32
  }
  func.func @transform_7(%arg0: i32, %arg1: i32, %arg2: i32) -> (i32, i32, i32, i32) {
    %c0_i32 = arith.constant 0 : i32
    %c0_i32_0 = arith.constant 0 : i32
    return %arg0, %arg2, %arg1, %c0_i32 : i32, i32, i32, i32
  }
}

</mosaic_0001>

<bundles_post_ra>
// kernel: tpu_custom_call.1
= control target key start
LH: loop header
LB: loop body
LE: loop exit
PB: predicated region body
PF: predicated region fallthrough
CT: control target
= control target key end

     0   :  { %s1968_s0 = inlined_call_operand.hbm [shape: bf16[2,4,8,8], index: 0, kind: input, shape index: {}]   ;;  %s1969_s1 = inlined_call_operand.hbm [shape: bf16[2,4,8,8], index: 1, kind: input, shape index: {}]   ;;  %s1970_s2 = inlined_call_operand.hbm [shape: bf16[2,4,8,8], index: 2, kind: input, shape index: {}]   ;;  %s1971_s3 = inlined_call_operand.hbm [shape: bf16[2,8,8], index: 3, kind: input, shape index: {}]   ;;  %s1972_s4 = inlined_call_operand.hbm [shape: bf16[4,8,32], index: 4, kind: input, shape index: {}]   ;;  %s1973_s5 = inlined_call_operand.vmem [shape: f32[1,32], index: 5, kind: input, shape index: {}]   ;;  %s1974_s6 = inlined_call_operand.hbm [shape: f32[2,8,32], index: 6, kind: output, shape index: {0}]   ;;  %s1975_s7 = inlined_call_operand.hbm [shape: bf16[2,4,8,8], index: 7, kind: output, shape index: {1}]  }
   0x1   :  { %2003 = sst [smem:[#allocation37_spill]] %s1968_s0 }
   0x2   :  { %2004 = sst [smem:[#allocation38_spill]] %s1969_s1 }
   0x3   :  { %2005 = sst [smem:[#allocation39_spill]] %s1971_s3 }
   0x4   :  { %2006 = sst [smem:[#allocation40_spill]] %s1972_s4 }
   0x5   :  { %2007 = sst [smem:[#allocation41_spill]] %s1973_s5 }
   0x6   :  { %2008 = sst [smem:[#allocation42_spill]] %s1974_s6 }
   0x7   :  { %2009 = sst [smem:[#allocation43_spill]] %s1975_s7 }
   0x8   :  { %13 = vsyncpa [#allocation4], 0 }
   0x9   :  { %15 = vsyncpa [#allocation4 + $0x1], 0 }
   0xa   :  { %16 = vsyncpa [#allocation7], 0 }
   0xb   :  { %18 = vsyncpa [#allocation7 + $0x1], 0 }
   0xc   :  { %19 = vsyncpa [#allocation10], 0 }
   0xd   :  { %21 = vsyncpa [#allocation10 + $0x1], 0 }
   0xe   :  { %22 = vsyncpa [#allocation5], 0 }
   0xf   :  { %24 = vsyncpa [#allocation5 + $0x1], 0 }
  0x10   :  { %25 = vsyncpa [#allocation14], 0 }
  0x11   :  { %27 = vsyncpa [#allocation14 + $0x1], 0  ;;  %s1524_s24 = smov 0   ;;  %s1526_s25 = smov 0  }
  0x12   :  { %s1528_s26 = smov 0   ;;  %s1530_s27 = smov 0  }
  0x13   :  { %s1532_s28 = smov 0   ;;  %s1534_s29 = smov 0  }
  0x14   :  { %s1536_s30 = smov 0   ;;  %s1538_s8 = smov 0  }
  0x15   :  { %s1540_s9 = smov 0   ;;  %s1542_s10 = smov 0  }
  0x16   :  { %s1544_s11 = smov 0   ;;  %s1546_s12 = smov 0  }
  0x17   :  { %s1548_s13 = smov 0   ;;  %s1550_s14 = smov 0  }
  0x18 LB: > { %2010 = sst [smem:[#allocation21_spill]] %s1432_s27  ;;  %s1595_s15 = sadd.s32 4294967295, %s1472_s14   ;;  %s1472_s14 = sphi %s1550_s14, %s33_s14   ;;  %s1468_s13 = sphi %s1548_s13, %s2081_s13   ;;  %s1464_s12 = sphi %s1546_s12, %s2090_s12   ;;  %s1460_s11 = sphi %s1544_s11, %s2079_s11   ;;  %s1456_s10 = sphi %s1542_s10, %s2089_s10   ;;  %s1452_s9 = sphi %s1540_s9, %s2088_s9   ;;  %s1448_s8 = sphi %s1538_s8, %s2087_s8   ;;  %s1444_s30 = sphi %s1536_s30, %s2077_s30   ;;  %s1440_s29 = sphi %s1534_s29, %s2076_s29   ;;  %s1436_s28 = sphi %s1532_s28, %s2086_s28   ;;  %s1432_s27 = sphi %s1530_s27, %s2085_s27   ;;  %s1428_s26 = sphi %s1528_s26, %s2084_s26   ;;  %s1424_s25 = sphi %s1526_s25, %s2083_s25   ;;  %s1420_s24 = sphi %s1524_s24, %s2082_s24  }
  0x19   : > { %2011 = sst [smem:[#allocation22_spill]] %s1440_s29  ;;  %s927_s16 = sadd.s32 4294967294, %s1472_s14  }
  0x1a   : > { %2012 = sst [smem:[#allocation23_spill]] %s1444_s30  ;;  %s45_s17 = sadd.s32 1, %s1464_s12 }
  0x1b   : > { %2013 = sst [smem:[#allocation24_spill]] %s1448_s8  ;;  %s52_s18 = sadd.s32 1, %s1468_s13 }
  0x1c   : > { %2014 = sst [smem:[#allocation25_spill]] %s1456_s10  ;;  %p46_p0 = scmp.ge.s32.totalorder %s45_s17, 4 }
  0x1d   : > { %2015 = sst [smem:[#allocation26_spill]] %s1460_s11  ;;  %s63_s19 = sadd.s32 1, %s1452_s9 }
  0x1e   : > { %2016 = sst [smem:[#allocation27_spill]] %s1468_s13  ;;  %p70_p1 = scmp.ne.s32.totalorder %s1452_s9, %s1448_s8 }
  0x1f   : > { %p1992_p2 = scmp.eq.s32.totalorder %s1472_s14, 0  ;;  %s2092_s17 = smov (%p46_p0, %s45_s17), 0 }
  0x20   : > { %2017 = sst [smem:[#allocation28_spill]] %s2092_s17  ;;  %s2094_s18 = smov (!%p46_p0, %s52_s18), %s1468_s13 }
  0x21   : > { %s1609_s20 = ssub.s32 %s1464_s12, %s2092_s17  ;;  %p1616_p3 = por %p1992_p2, %p70_p1 }
  0x22   : > { %p54_p4 = scmp.ge.s32.totalorder %s2094_s18, 2  ;;  %p76_p5 = scmp.ne.s32.totalorder %s1448_s8, %s1444_s30 }
  0x23   : > { %p1991_p6 = scmp.eq.s32.totalorder %s1595_s15, 0  ;;  %p1990_p9 = scmp.eq.s32.totalorder %s1595_s15, 7 }
  0x24   : > { %s2096_s18 = smov (%p54_p4, %s2094_s18), 0  ;;  %p1637_p10 = scmp.eq.s32.totalorder %s927_s16, 7 }
  0x25   : > { %2019 = sst [smem:[#allocation29_spill]] %s2096_s18  ;;  %p1628_p8 = por %p1991_p6, %p76_p5 }
  0x26   : > { %s1635_s23 = ssub.s32 %s1468_s13, %s2096_s18  ;;  %p1648_p11 = por %p1990_p9, %p70_p1 }
  0x27   : > { %s2020_s22 = scalar_select %p1628_p8, 1, 0 }
  0x28   : > { %s58_s30 = sor.u32 %s1609_s20, %s1635_s23  ;;  %p1654_p13 = por %p1637_p10, %p76_p5 }
  0x29   : > { %2021 = sst [smem:[#allocation30_spill]] %s2020_s22  ;;  %p61_p12 = scmp.eq.s32.totalorder %s58_s30, 0 }
  0x2a   : > { %s2023_s7 = scalar_select %p1648_p11, 1, 0 }
  0x2b   : > { %s2025_s18 = scalar_select %p1654_p13, 1, 0 }
  0x2c   : > { %2024 = sst [smem:[#allocation31_spill]] %s2023_s7  ;;  %p1989_p0 = scmp.lt.s32.totalorder %s1472_s14, 8 }
  0x2d   : > { %2026 = sst [smem:[#allocation32_spill]] %s2025_s18  ;;  %s1987_s6 = sand.u32 1, %s1452_s9  }
  0x2e   : > { %s1660_s16 = scalar_select %p61_p12, %s1452_s9, %s63_s19  }
  0x2f   : > { %s931_s11 = sshll.u32 %s1468_s13, 2  ;;  %s1666_s5 = sshll.u32 %s1987_s6, 2 }
  0x30   : > { %2027 = sst [smem:[#allocation33_spill]] %s1660_s16  ;;  %s302_s10 = sadd.s32 %s1464_s12, %s931_s11 }
  0x31   : > { %s1669_s22 = sshll.u32 %s302_s10, 6  ;;  %p1675_p1 = pnand %p1989_p0, %p1616_p3 }
  0x32   : > { %s1995_s19 = sand.u32 1, %s1472_s14   ;;  %s2029_s1 = sld [smem:[#allocation38_spill]] }
  0x33   : > { %s317_s6 = scalar_lea.vmem [#allocation6], %s1666_s5  ;;  %p943_p4 = scmp.ge.s32.totalorder %s1472_s14, 1 }
  0x34   : > { %s326_s8 = sshll.u32 %s317_s6, 4  ;;  %s1688_s10 = scalar_lea.sflag [#allocation7], %s1995_s19  ;;  %s327_s8 = int_to_ptr.vmem [resolvable:$true] %s326_s8 }
  0x35   : > { %p1993_p5 = pneg %p1675_p1  ;;  %s1159_s11 = scalar_lea.vmem %s327_s8, 64 }
  0x36   : > { %p1160_p3 = scmp.ne.s32.totalorder %s327_s8, %s1159_s11  ;;  %s1474_s21 = smov [#allocation6]  }
  0x37   : > { %s1164_s4 = sshll.u32 %s1474_s21, 4  ;;  %s1165_s4 = int_to_ptr.vmem [resolvable:$false] %s1164_s4 }
  0x38   : > { %s324_s7 = scalar_lea.hbm %s2029_s1, %s1669_s22  ;;  %p1162_p12 = pnand %p1160_p3, %p1993_p5 }
  0x39   : > { %s1166_s18 = scalar_lea.vmem %s1165_s4, 128  ;;  %p1167_p0 = scmp.lt.s32.totalorder %s327_s8, %s1165_s4 }
  0x3a   : > { %p1163_p7 = pneg %p1162_p12  ;;  %p1168_p9 = scmp.lt.s32.totalorder %s1166_s18, %s1159_s11 }
  0x3c   : > { %p1169_p6 = por %p1168_p9, %p1167_p0 }
  0x3e   : > { %p1170_p2 = pnand %p1169_p6, %p1163_p7 }
  0x40   : > { %1173 = shalt.err (!%p1170_p2)
}
  0x41   : > { %1008 = dma.hbm_to_vmem [thread:$0]  (!%p1675_p1), %s324_s7, 64, %s327_s8, %s1688_s10  }
  0x42   : > { %p388_p2 = scmp.lt.s32.totalorder %s1472_s14, 9  ;;  %p145_p7 = scmp.eq.s32.totalorder %s1635_s23, 0 }
  0x43   : > { %s147_s6 = sadd.s32 1, %s1440_s29  ;;  %p154_p9 = scmp.ne.s32.totalorder %s1440_s29, %s1436_s28 }
  0x44   : > { %p1701_p6 = pnand %p943_p4, %p388_p2  ;;  %p160_p0 = scmp.ne.s32.totalorder %s1436_s28, %s1432_s27 }
  0x45   : > { %s1712_s16 = scalar_select %p145_p7, %s1440_s29, %s147_s6  }
  0x46   : > { %p2032_p3 = scmp.eq.s32.totalorder %s1472_s14, 0  ;;  %p2033_p5 = scmp.eq.s32.totalorder %s1595_s15, 0 }
  0x47   : > { %2031 = sst [smem:[#allocation34_spill]] %s1712_s16  ;;  %p2036_p11 = scmp.eq.s32.totalorder %s1595_s15, 7 }
  0x48   : > { %p156_p12 = por %p154_p9, %p2032_p3  ;;  %p1718_p13 = por %p160_p0, %p2033_p5 }
  0x49   : > { %p1724_p4 = por %p2036_p11, %p154_p9  ;;  %p1730_p2 = por %p1637_p10, %p160_p0 }
  0x4a   : > { %s2034_s11 = scalar_select %p1718_p13, 1, 0 }
  0x4b   : > { %s2037_s7 = scalar_select %p1724_p4, 1, 0 }
  0x4c   : > { %2035 = sst [smem:[#allocation35_spill]] %s2034_s11  ;;  %s355_s23 = sand.u32 1, %s1440_s29  }
  0x4d   : > { %2038 = sst [smem:[#allocation36_spill]] %s2037_s7  ;;  %s939_s21 = sshll.u32 %s355_s23, 2 }
  0x4e   : > { %s2039_s8 = scalar_select %p1730_p2, 1, 0 }
  0x4f   : > { %s940_s18 = sshll.u32 %s1468_s13, 6  ;;  %s2040_s3 = sld [smem:[#allocation39_spill]] }
  0x50   : > { %s357_s16 = scalar_lea.vmem [#allocation9], %s939_s21  ;;  %p2041_p5 = scmp.lt.s32.totalorder %s1472_s14, 8 }
  0x51   : > { %s365_s27 = sshll.u32 %s357_s16, 4  ;;  %s2043_s17 = sand.u32 1, %s1472_s14   ;;  %s366_s27 = int_to_ptr.vmem [resolvable:$true] %s365_s27 }
  0x52   : > { %p1741_p7 = pnand %p2041_p5, %p156_p12  ;;  %s1747_s7 = scalar_lea.sflag [#allocation10], %s2043_s17 }
  0x53   : > { %s1187_s23 = scalar_lea.vmem %s366_s27, 64  ;;  %s1475_s19 = smov [#allocation9]  }
  0x54   : > { %p1176_p10 = pneg %p1741_p7  ;;  %p1188_p11 = scmp.ne.s32.totalorder %s366_s27, %s1187_s23 }
  0x55   : > { %s363_s1 = scalar_lea.hbm %s2040_s3, %s940_s18  ;;  %s1192_s18 = sshll.u32 %s1475_s19, 4  ;;  %s1193_s18 = int_to_ptr.vmem [resolvable:$false] %s1192_s18 }
  0x56   : > { %p1190_p9 = pnand %p1188_p11, %p1176_p10  ;;  %s1194_s16 = scalar_lea.vmem %s1193_s18, 128 }
  0x57   : > { %p1195_p3 = scmp.lt.s32.totalorder %s366_s27, %s1193_s18  ;;  %p1196_p12 = scmp.lt.s32.totalorder %s1194_s16, %s1187_s23 }
  0x58   : > { %p1191_p0 = pneg %p1190_p9 }
  0x59   : > { %p1197_p5 = por %p1196_p12, %p1195_p3 }
  0x5b   : > { %p1198_p2 = pnand %p1197_p5, %p1191_p0 }
  0x5d   : > { %1201 = shalt.err (!%p1198_p2)
}
  0x5e   : > { %1014 = dma.hbm_to_vmem [thread:$0]  (!%p1741_p7), %s363_s1, 64, %s366_s27, %s1747_s7  }
  0x5f   : > { %s2044_s0 = sld [smem:[#allocation37_spill]]  ;;  %s296_s19 = scalar_lea.vmem [#allocation3], %s1666_s5 }
  0x60   : > { %s306_s3 = sshll.u32 %s296_s19, 4  ;;  %s2045_s18 = sand.u32 1, %s1452_s9   ;;  %s307_s3 = int_to_ptr.vmem [resolvable:$true] %s306_s3 }
  0x61   : > { %s293_s23 = scalar_lea.sflag [#allocation4], %s2045_s18  ;;  %s1215_s16 = scalar_lea.vmem %s307_s3, 64 }
  0x62   : > { %p1216_p10 = scmp.ne.s32.totalorder %s307_s3, %s1215_s16  ;;  %p2046_p2 = pneg %p1675_p1 }
  0x63   : > { %s1476_s11 = smov [#allocation3]  }
  0x64   : > { %p1218_p11 = pnand %p1216_p10, %p2046_p2  ;;  %s1220_s13 = sshll.u32 %s1476_s11, 4  ;;  %s1221_s13 = int_to_ptr.vmem [resolvable:$false] %s1220_s13 }
  0x65   : > { %s304_s17 = scalar_lea.hbm %s2044_s0, %s1669_s22  ;;  %s1222_s29 = scalar_lea.vmem %s1221_s13, 128 }
  0x66   : > { %p1219_p9 = pneg %p1218_p11  ;;  %p1223_p7 = scmp.lt.s32.totalorder %s307_s3, %s1221_s13 }
  0x67   : > { %p1224_p0 = scmp.lt.s32.totalorder %s1222_s29, %s1215_s16 }
  0x69   : > { %p1225_p3 = por %p1224_p0, %p1223_p7 }
  0x6b   : > { %p1226_p12 = pnand %p1225_p3, %p1219_p9 }
  0x6d   : > { %1229 = shalt.err (!%p1226_p12)
}
  0x6e   : > { %1005 = dma.hbm_to_vmem [thread:$0]  (!%p1675_p1), %s304_s17, 64, %s307_s3, %s293_s23  }
  0x6f   : > { %s344_s21 = scalar_lea.hbm %s1970_s2, %s1669_s22  ;;  %s337_s6 = scalar_lea.vmem [#allocation8], %s1666_s5 }
  0x70   : > { %s346_s19 = sshll.u32 %s337_s6, 4  ;;  %p2047_p10 = pmov %p2046_p2  ;;  %s347_s19 = int_to_ptr.vmem [resolvable:$true] %s346_s19 }
  0x71   : > { %s1243_s18 = scalar_lea.vmem %s347_s19, 64  ;;  %s1477_s29 = smov [#allocation8]  }
  0x72   : > { %p1244_p5 = scmp.ne.s32.totalorder %s347_s19, %s1243_s18  ;;  %s1248_s13 = sshll.u32 %s1477_s29, 4  ;;  %s1249_s13 = int_to_ptr.vmem [resolvable:$false] %s1248_s13 }
  0x73   : > { %s1250_s16 = scalar_lea.vmem %s1249_s13, 128  ;;  %p1251_p9 = scmp.lt.s32.totalorder %s347_s19, %s1249_s13 }
  0x74   : > { %p1246_p2 = pnand %p1244_p5, %p2047_p10  ;;  %p1252_p7 = scmp.lt.s32.totalorder %s1250_s16, %s1243_s18 }
  0x76   : > { %p1247_p11 = pneg %p1246_p2  ;;  %p1253_p0 = por %p1252_p7, %p1251_p9 }
  0x78   : > { %p1254_p3 = pnand %p1253_p0, %p1247_p11 }
  0x7a   : > { %1257 = shalt.err (!%p1254_p3)
}
  0x7b   : > { %1011 = dma.hbm_to_vmem [thread:$0]  (!%p1675_p1), %s344_s21, 64, %s347_s19, %s1688_s10  }
  0x7c   : > { %s173_s3 = sadd.s32 1, %s1428_s26  ;;  %p2048_p12 = scmp.eq.s32.totalorder %s1609_s20, 0 }
  0x7d   : > { %p180_p5 = scmp.ne.s32.totalorder %s1428_s26, %s1424_s25  ;;  %p186_p10 = scmp.ne.s32.totalorder %s1424_s25, %s1420_s24 }
  0x7e   : > { %s1781_s5 = scalar_select %p2048_p12, %s1428_s26, %s173_s3  }
  0x7f   : > { %s374_s22 = sand.u32 1, %s1428_s26   ;;  %s942_s30 = sshll.u32 %s1464_s12, 6 }
  0x80   : > { %p2049_p2 = scmp.eq.s32.totalorder %s1472_s14, 0  ;;  %p2050_p9 = scmp.eq.s32.totalorder %s1595_s15, 0 }
  0x81   : > { %s941_s23 = sshll.u32 %s374_s22, 2  ;;  %s2052_s27 = sld [smem:[#allocation40_spill]] }
  0x82   : > { %p182_p11 = por %p180_p5, %p2049_p2  ;;  %p1793_p7 = por %p186_p10, %p2050_p9 }
  0x83   : > { %p2053_p1 = scmp.lt.s32.totalorder %s1472_s14, 8  ;;  %s376_s24 = scalar_lea.vmem [#allocation11], %s941_s23 }
  0x84   : > { %s383_s21 = sshll.u32 %s376_s24, 4  ;;  %s1478_s19 = smov [#allocation11]   ;;  %s384_s21 = int_to_ptr.vmem [resolvable:$true] %s383_s21 }
  0x85   : > { %p1802_p0 = pnand %p2053_p1, %p182_p11  ;;  %s1271_s6 = scalar_lea.vmem %s384_s21, 64 }
  0x86   : > { %p1272_p12 = scmp.ne.s32.totalorder %s384_s21, %s1271_s6  ;;  %s1276_s18 = sshll.u32 %s1478_s19, 4  ;;  %s1277_s18 = int_to_ptr.vmem [resolvable:$false] %s1276_s18 }
  0x87   : > { %s381_s10 = scalar_lea.hbm %s2052_s27, %s942_s30  ;;  %p1260_p3 = pneg %p1802_p0 }
  0x88   : > { %s1278_s29 = scalar_lea.vmem %s1277_s18, 128  ;;  %p1279_p2 = scmp.lt.s32.totalorder %s384_s21, %s1277_s18 }
  0x89   : > { %p1274_p5 = pnand %p1272_p12, %p1260_p3  ;;  %p1280_p9 = scmp.lt.s32.totalorder %s1278_s29, %s1271_s6 }
  0x8b   : > { %p1275_p10 = pneg %p1274_p5  ;;  %p1281_p11 = por %p1280_p9, %p1279_p2 }
  0x8d   : > { %p1282_p1 = pnand %p1281_p11, %p1275_p10 }
  0x8f   : > { %1285 = shalt.err (!%p1282_p1)
}
  0x90   : > { %1017 = dma.hbm_to_vmem [thread:$0]  (!%p1802_p0), %s381_s10, 64, %s384_s21, %s1747_s7  }
  0x91   : > { %392 = sbr.rel (%p1701_p6) target bundleno = 1151 (0x47f), region = 44  ;;  %s2055_s13 = sld [smem:[#allocation24_spill]] (!%p1701_p6) }
  0x97   : > { %s1814_s3 = sand.u32 1, %s2055_s13  }
  0x98   : > { %s1817_s22 = sshll.u32 %s1814_s3, 2  ;;  %s395_s30 = scalar_lea.sflag [#allocation4], %s1814_s3 }
  0x99   : > { %s398_s23 = scalar_lea.vmem [#allocation3], %s1817_s22 }
  0x9a   : > { %1395 = dma.done.wait (%p1628_p8), %s395_s30, 64  }
  0x9b   : > { %1397 = vsyncadd (%p1628_p8), %s395_s30, 4294967232  ;;  %s403_s4 = sand.u32 1, %s1595_s15   ;;  %s407_s11 = scalar_lea.vmem [#allocation6], %s1817_s22 }
  0x9c   : > { %s404_s7 = scalar_lea.sflag [#allocation7], %s403_s4 }
  0x9d   : > { %1399 = dma.done.wait (%p1628_p8), %s404_s7, 128  }
  0x9e   : > { %1401 = vsyncadd (%p1628_p8), %s404_s7, 4294967168  ;;  %s1832_s27 = sand.u32 1, %s1436_s28   ;;  %s416_s20 = scalar_lea.vmem [#allocation8], %s1817_s22 }
  0x9f   : > { %s947_s10 = sshll.u32 %s1832_s27, 2  ;;  %s422_s24 = scalar_lea.sflag [#allocation10], %s403_s4 }
  0xa0   : > { %s425_s21 = scalar_lea.vmem [#allocation9], %s947_s10 }
  0xa1   : > { %1403 = dma.done.wait (%p1718_p13), %s422_s24, 64  }
  0xa2   : > { %1405 = vsyncadd (%p1718_p13), %s422_s24, 4294967232  ;;  %s432_s15 = sand.u32 1, %s1424_s25  }
  0xa3   : > { %s1841_s6 = sshll.u32 %s432_s15, 2 }
  0xa4   : > { %s434_s19 = scalar_lea.vmem [#allocation11], %s1841_s6 }
  0xa5   : > { %1407 = dma.done.wait (%p1793_p7), %s422_s24, 64  }
  0xa6   : > { %1409 = vsyncadd (%p1793_p7), %s422_s24, 4294967232  ;;  %s949_s18 = sshll.u32 %s1832_s27, 3  ;;  %s489_s13 = scalar_lea.vmem [#allocation13], %s1817_s22 }
  0xa7   : > { %s1849_s29 = scalar_lea.vmem [#allocation12], %s949_s18  ;;  %s2058_s16 = sld [smem:[#allocation25_spill]] }
  0xad   : > { %p951_p8 = scmp.ne.s32.totalorder %s2058_s16, 0 }
  0xaf   : > { %494 = sbr.rel (%p951_p8) target bundleno = 182 (0xb6), region = 68 }
  0xb4   : > { %vm495_vm0 = vcmask 261120   ;;  %v1479_v0 = vmov 0.0  }
  0xb5   : > { %496 = vst.msk [vmem:[#allocation2] sm:$0xff] %vm495_vm0, %v1479_v0 }
  0xb6 PF: > { %v498_v1 = vld [vmem:[%s407_s11] sm:$0xf]  ;;  %vm501_vm1 = vcmask 64512   ;;  %v1480_v2 = vmov 0.0   ;;  %vm1481_vm2 = vmmov 0   ;;  %vm566_vm3 = vcmask 1043456  }
  0xb7   : > { %970 = vmatprep.subr.bf16.mxu0 %v1480_v2  ;;  %v506_v3 = vsel %vm501_vm1, %v498_v1, 0  ;;  %972 = vmatprep.mubr.msk.bf16.mxu0 %vm1481_vm2, %v1480_v2  ;;  %v497_v4 = vld [vmem:[%s398_s23] sm:$0xf]  ;;  %v499_v5 = vld [vmem:[%s425_s21] sm:$0xf]  ;;  %vm560_vm4 = vcmask 60416  }
  0xb8   : > { %971 = vmatpush3.bf16.xpose.msra.mxu0 %v506_v3  ;;  %976 = vmatprep.subr.bf16.mxu1 %v1480_v2  ;;  %v500_v6 = vunpack.c.l.bf16 %v499_v5  ;;  %v562_v18 = vld [vmem:[%s416_s20] sm:$0xf]  ;;  %v612_v22 = vld [vmem:[%s434_s19] sm:$0xf]  ;;  %vm660_vm5 = vcmask 261120   ;;  %s2059_s17 = sld [smem:[#allocation25_spill]] }
  0xb9   : > { %978 = vmatprep.mubr.msk.bf16.mxu1 %vm1481_vm2, %v1480_v2  ;;  %v568_v19 = vsel %vm566_vm3, %v562_v18, 0  ;;  %v617_v24 = vsel %vm566_vm3, %v612_v22, 0 }
  0xba   : > { %977 = vmatpush3.bf16.msra.mxu1 %v568_v19 }
  0xbb   : > { %982 = vmatprep.subr.bf16.mxu1 %v1480_v2 }
  0xbc   : > { %v610_v31 = vld [vmem:[#allocation2] sm:$0xff] }
  0xbe   : > { %p955_p13 = scmp.ne.s32.totalorder %s2059_s17, 3 }
  0xbf   : > { %973 = vmatmul.mubr.msk.bf16.vlgmr.msra.gmra.mxu0 %vm501_vm1, %v497_v4  ;;  %s2060_s4 = sld [smem:[#allocation41_spill]] (!%p955_p13) }
 0x17f   : > { %v542_v7 = vpop.f32.mrf.mxu0 }
 0x180   : > { %v543_v8 = vadd.f32 %v542_v7, %v500_v6 }
 0x181   : > { %v974_v9 = vpop.f32.mrf.mxu0 }
 0x182   : > { %v548_v10 = vsel %vm501_vm1, %v543_v8, -inf }
 0x183   : > { %549 = vmax.xlane.f32.xlu0 %v548_v10  ;;  %v545_v11 = vpop.f32.mrf.mxu0 }
 0x185   : > { %v975_v12 = vpop.f32.mrf.mxu0 }
 0x20c   : > { %v550_v13 = vpop.xlane.xlu0 %549 }
 0x20d   : > { %v551_v14 = vsub.f32 %v543_v8, %v550_v13 }
 0x20f   : > { %v552_v15 = vmul.f32 1.442695, %v551_v14 }
 0x211   : > { %1142 = vpow2.f32 %v552_v15 }
 0x21e   : > { %v1143_v16 = vpop.eup %1142 }
 0x21f   : > { %v554_v17 = vsel %vm501_vm1, %v1143_v16, 0.0 }
 0x220   : > { %555 = vadd.xlane.f32.xlu0 %v554_v17 }
 0x2a9   : > { %v556_v20 = vpop.xlane.xlu0 %555 }
 0x2aa   : > { %1144 = vrcp.f32 %v556_v20 }
 0x2b7   : > { %v1145_v21 = vpop.eup %1144 }
 0x2b8   : > { %v558_v23 = vmul.f32 %v1145_v21, %v1143_v16 }
 0x2ba   : > { %v559_v25 = vpack.c.bf16 %v558_v23, %v558_v23 }
 0x2bc   : > { %561 = vst.msk [vmem:[%s489_s13] sm:$0xf] %vm560_vm4, %v559_v25  ;;  %979 = vmatmul.mubr.msk.bf16.vlgmr.msra.gmra.mxu1 %vm501_vm1, %v559_v25 }
 0x2bd   : > { %983 = vmatpush3.bf16.msra.mxu1 %v617_v24  ;;  %984 = vmatprep.mubr.msk.bf16.mxu1 %vm1481_vm2, %v1480_v2 }
 0x37c   : > { %v604_v26 = vpop.f32.mrf.mxu1 }
 0x37d   : > { %v611_v27 = vpack.c.bf16 %v604_v26, %v604_v26 }
 0x37e   : > { %v980_v28 = vpop.f32.mrf.mxu1 }
 0x37f   : > { %985 = vmatmul.mubr.msk.bf16.vlgmr.msra.gmra.mxu1 %vm501_vm1, %v611_v27 }
 0x380   : > { %v607_v29 = vpop.f32.mrf.mxu1 }
 0x382   : > { %v981_v30 = vpop.f32.mrf.mxu1 }
 0x43f   : > { %v653_v32 = vpop.f32.mrf.mxu1 }
 0x440   : > { %v659_v33 = vadd.f32 %v653_v32, %v610_v31 }
 0x441   : > { %v986_v34 = vpop.f32.mrf.mxu1  ;;  %665 = sbr.rel (%p955_p13) target bundleno = 1101 (0x44d), region = 72 }
 0x442   : > { %661 = vst.msk [vmem:[#allocation2] sm:$0xff] %vm660_vm5, %v659_v33 }
 0x443   : > { %v656_v35 = vpop.f32.mrf.mxu1 }
 0x445   : > { %v987_v36 = vpop.f32.mrf.mxu1 }
 0x446   : > { %v956_v38 = vld [vmem:[%s2060_s4] ss:$0 sm:$0xff] }
 0x449   : > { %v666_v37 = vld [vmem:[#allocation2] sm:$0xff] }
 0x44a   : > { %v674_v39 = vadd.f32 %v956_v38, %v666_v37 }
 0x44c   : > { %675 = vst.msk [vmem:[%s1849_s29] sm:$0xff] %vm660_vm5, %v674_v39 }
 0x44d PF: > { %s2061_s7 = sld [smem:[#allocation26_spill]]  ;;  %s696_s6 = sshll.u32 %s1849_s29, 4  ;;  %s697_s6 = int_to_ptr.vmem [resolvable:$true] %s696_s6 }
 0x44e   : > { %s2063_s24 = sld [smem:[#allocation42_spill]]  ;;  %s677_s19 = scalar_lea.sflag [#allocation5], %s1832_s27 }
 0x44f   : > { %s1286_s18 = scalar_lea.vmem %s697_s6, 128  ;;  %s1482_s16 = smov [#allocation12]  }
 0x450   : > { %p1287_p6 = scmp.ne.s32.totalorder %s697_s6, %s1286_s18  ;;  %s1290_s17 = sshll.u32 %s1482_s16, 4  ;;  %s1291_s17 = int_to_ptr.vmem [resolvable:$false] %s1290_s17 }
 0x451   : > { %s1292_s30 = scalar_lea.vmem %s1291_s17, 256  ;;  %p1293_p3 = scmp.lt.s32.totalorder %s697_s6, %s1291_s17 }
 0x452   : > { %p1288_p7 = pnand %p1287_p6, %p1724_p4  ;;  %p1294_p12 = scmp.lt.s32.totalorder %s1292_s30, %s1286_s18 }
 0x453   : > { %s959_s1 = sshll.u32 %s2061_s7, 7 }
 0x454   : > { %s2064_s21 = smov %s2063_s24  ;;  %s694_s15 = scalar_lea.hbm %s2063_s24, %s959_s1 }
 0x455   : > { %p1289_p0 = pneg %p1288_p7  ;;  %p1295_p5 = por %p1294_p12, %p1293_p3 }
 0x457   : > { %p1296_p10 = pnand %p1295_p5, %p1289_p0 }
 0x459   : > { %1299 = shalt.err (!%p1296_p10)
}
 0x45a   : > { %s1300_s23 = scalar_lea.hbm %s694_s15, 128  ;;  %s1304_s4 = scalar_lea.hbm %s2064_s21, 256 }
 0x45b   : > { %p1301_p2 = scmp.ne.s32.totalorder %s694_s15, %s1300_s23  ;;  %p1305_p1 = scmp.lt.s32.totalorder %s694_s15, %s2064_s21 }
 0x45c   : > { %p1306_p8 = scmp.lt.s32.totalorder %s1304_s4, %s1300_s23 }
 0x45d   : > { %p1302_p9 = pnand %p1301_p2, %p1724_p4 }
 0x45e   : > { %p1307_p13 = por %p1306_p8, %p1305_p1 }
 0x45f   : > { %p1303_p11 = pneg %p1302_p9 }
 0x461   : > { %p1308_p6 = pnand %p1307_p13, %p1303_p11 }
 0x463   : > { %1311 = shalt.err (!%p1308_p6)
}
 0x464   : > { %s2065_s20 = sld [smem:[#allocation25_spill]]  ;;  %s960_s18 = sshll.u32 %s2061_s7, 2 }
 0x465   : > { %s2066_s24 = sld [smem:[#allocation31_spill]]  ;;  %s712_s16 = sshll.u32 %s489_s13, 4  ;;  %s713_s16 = int_to_ptr.vmem [resolvable:$true] %s712_s16 }
 0x466   : > { %998 = dma.vmem_to_hbm [thread:$0]  (%p1724_p4), %s697_s6, 128, %s694_s15, %s677_s19  }
 0x467   : > { %s2067_s23 = sld [smem:[#allocation43_spill]]  ;;  %s682_s1 = scalar_lea.sflag [#allocation14], %s1814_s3 }
 0x468   : > { %s1312_s10 = scalar_lea.vmem %s713_s16, 64  ;;  %s1483_s11 = smov [#allocation13]  }
 0x469   : > { %p1313_p7 = scmp.ne.s32.totalorder %s713_s16, %s1312_s10  ;;  %s1316_s0 = sshll.u32 %s1483_s11, 4  ;;  %s1317_s0 = int_to_ptr.vmem [resolvable:$false] %s1316_s0 }
 0x46a   : > { %s708_s17 = sadd.s32 %s2065_s20, %s960_s18  ;;  %s1318_s15 = scalar_lea.vmem %s1317_s0, 128 }
 0x46b   : > { %s961_s30 = sshll.u32 %s708_s17, 6  ;;  %p2068_p0 = scmp.ne.s32.totalorder %s2066_s24, 0 }
 0x46c   : > { %p1319_p4 = scmp.lt.s32.totalorder %s713_s16, %s1317_s0  ;;  %p1320_p5 = scmp.lt.s32.totalorder %s1318_s15, %s1312_s10 }
 0x46d   : > { %s710_s4 = scalar_lea.hbm %s2067_s23, %s961_s30  ;;  %p1314_p3 = pnand %p1313_p7, %p2068_p0 }
 0x46e   : > { %p1321_p10 = por %p1320_p5, %p1319_p4 }
 0x46f   : > { %p1315_p12 = pneg %p1314_p3 }
 0x471   : > { %p1322_p2 = pnand %p1321_p10, %p1315_p12 }
 0x473   : > { %1325 = shalt.err (!%p1322_p2)
}
 0x474   : > { %s1326_s22 = scalar_lea.hbm %s710_s4, 64  ;;  %s1330_s7 = scalar_lea.hbm %s2067_s23, 512 }
 0x475   : > { %p1327_p9 = scmp.ne.s32.totalorder %s710_s4, %s1326_s22  ;;  %p1331_p8 = scmp.lt.s32.totalorder %s710_s4, %s2067_s23 }
 0x476   : > { %p1332_p13 = scmp.lt.s32.totalorder %s1330_s7, %s1326_s22 }
 0x477   : > { %p1328_p11 = pnand %p1327_p9, %p2068_p0 }
 0x478   : > { %p1333_p6 = por %p1332_p13, %p1331_p8 }
 0x479   : > { %p1329_p1 = pneg %p1328_p11 }
 0x47b   : > { %p1334_p7 = pnand %p1333_p6, %p1329_p1 }
 0x47d   : > { %1337 = shalt.err (!%p1334_p7)
}
 0x47e   : > { %999 = dma.vmem_to_hbm [thread:$0]  (%p2068_p0), %s713_s16, 64, %s710_s4, %s682_s1  }
 0x47f PF: > { %s2069_s0 = sld [smem:[#allocation21_spill]]  ;;  %p1026_p3 = scmp.ge.s32.totalorder %s1472_s14, 2 }
 0x480   : > { %p2070_p12 = scmp.ne.s32.totalorder %s2039_s8, 0 }
 0x482   : > { %p1019_p4 = pnand %p1026_p3, %p2070_p12 }
 0x484   : > { %p1020_p5 = pneg %p1019_p4 }
 0x485   : > { %s724_s20 = sand.u32 1, %s2069_s0  }
 0x486   : > { %s725_s18 = scalar_lea.sflag [#allocation5], %s724_s20 }
 0x487   : > { %1411 = dma.done.wait (%p1020_p5), %s725_s18, 128  }
 0x488   : > { %1413 = vsyncadd (%p1020_p5), %s725_s18, 4294967168  ;;  %s2071_s17 = sld [smem:[#allocation23_spill]] }
 0x489   : > { %s2072_s30 = sld [smem:[#allocation32_spill]] }
 0x48e   : > { %s733_s27 = sand.u32 1, %s2071_s17  }
 0x48f   : > { %p2073_p10 = scmp.ne.s32.totalorder %s2072_s30, 0  ;;  %s734_s24 = scalar_lea.sflag [#allocation14], %s733_s27 }
 0x491   : > { %p1022_p2 = pnand %p1026_p3, %p2073_p10 }
 0x493   : > { %p1023_p9 = pneg %p1022_p2 }
 0x495   : > { %1415 = dma.done.wait (%p1023_p9), %s734_s24, 64  }
 0x496   : > { %1417 = vsyncadd (%p1023_p9), %s734_s24, 4294967232  ;;  %s33_s14 = sadd.s32 1, %s1472_s14   ;;  %s2075_s8 = sld [smem:[#allocation22_spill]] }
 0x497   : > { %p1921_p0 = scmp.ge.s32.totalorder %s33_s14, 10   ;;  %s2076_s29 = sld [smem:[#allocation34_spill]] }
 0x498   : > { %s2077_s30 = sld [smem:[#allocation24_spill]]  ;;  %s2082_s24 = smov %s1424_s25 }
 0x499   : > { %s2078_s4 = sld [smem:[#allocation33_spill]]  ;;  %s2083_s25 = smov %s1428_s26 }
 0x49a   : > { %s2079_s11 = sld [smem:[#allocation27_spill]]  ;;  %s2084_s26 = smov %s1781_s5 }
 0x49b   : > { %s2080_s1 = sld [smem:[#allocation28_spill]]  ;;  %s2085_s27 = smov %s1436_s28 }
 0x49c   : > { %s2081_s13 = sld [smem:[#allocation29_spill]]  ;;  %s2086_s28 = smov %s2075_s8 }
 0x49d   : > { %s2087_s8 = smov %s1452_s9  ;;  %s2089_s10 = smov %s1464_s12 }
 0x49e   :  { %32 = sbr.rel (!%p1921_p0) target bundleno = 24 (0x18), region = 162 }
 0x49f   : > { %s2088_s9 = smov %s2078_s4 }
 0x4a1   : > { %s2090_s12 = smov %s2080_s1 }
 0x4a3   :  { %739 = vsyncpa [#allocation4], 1 }
 0x4a4   :  { %741 = vsyncpa [#allocation4 + $0x1], 1 }
 0x4a5   :  { %742 = vsyncpa [#allocation7], 1 }
 0x4a6   :  { %744 = vsyncpa [#allocation7 + $0x1], 1 }
 0x4a7   :  { %745 = vsyncpa [#allocation10], 1 }
 0x4a8   :  { %747 = vsyncpa [#allocation10 + $0x1], 1 }
 0x4a9   :  { %748 = vsyncpa [#allocation5], 1 }
 0x4aa   :  { %750 = vsyncpa [#allocation5 + $0x1], 1 }
 0x4ab   :  { %751 = vsyncpa [#allocation14], 1 }
 0x4ac   :  { %753 = vsyncpa [#allocation14 + $0x1], 1 }

</bundles_post_ra>
